<compile_context>
chip_gen: v7x
topology: tpu7x:2x2x1
jax: 0.10.0
libtpu: 0.0.40
codegen_flags: <defaults>
</compile_context>

<pallas_src>
import jax
import jax.numpy as jnp
from jax.experimental import pallas as pl
from jax.experimental.pallas import tpu as pltpu

_LANE = 128
_SUBLANE = 8
_NEG_INF = -1e30  # padded softmax columns -> exp underflows to exactly 0


def _round_up(x, m):
    return (x + m - 1) // m * m


def _cdiv(a, b):
    return -(-a // b)


# ---------------------------------------------------------------------------
# Kernel
# ---------------------------------------------------------------------------
def _value_net_kernel(x_ref, w1_ref, c1_ref, w2_ref, c2_ref, wd_ref, bd_ref,
                      probs_ref, *scratch):
    """Residual MLP blocks (BN pre-folded into W/c) + distributional softmax."""
    num_layers, _, hp = w1_ref.shape
    h = x_ref.shape[-1]

    if scratch:
        # H < Hp: zero-extend the unpadded activation tile into a lane-aligned
        # VMEM scratch (avoids materializing a 4x-wider copy of x in HBM).
        xpad_ref, = scratch
        xpad_ref[...] = jnp.zeros_like(xpad_ref)
        xpad_ref[:, :h] = x_ref[...].astype(jnp.float32)
        x0 = xpad_ref[...]
    else:
        x0 = x_ref[...].astype(jnp.float32)

    def block(l, x):
        y = jnp.dot(x.astype(w1_ref.dtype), w1_ref[l],
                    preferred_element_type=jnp.float32) + c1_ref[l]
        y = jnp.maximum(y, 0.0)                      # ReLU
        y = jnp.dot(y.astype(w2_ref.dtype), w2_ref[l],
                    preferred_element_type=jnp.float32) + c2_ref[l]
        return jnp.maximum(x + y, 0.0)               # residual + ReLU

    # fori_loop (not a static unroll) keeps live ranges bounded at larger L.
    x = jax.lax.fori_loop(0, num_layers, block, x0)

    # Distributional head: Linear(Hp -> Cp), softmax over dim=1.
    logits = jnp.dot(x.astype(wd_ref.dtype), wd_ref[...],
                     preferred_element_type=jnp.float32) + bd_ref[...]
    m = jnp.max(logits, axis=1, keepdims=True)
    e = jnp.exp(logits - m)                          # padded cols -> exactly 0
    s = jnp.sum(e, axis=1, keepdims=True)
    inv = pl.reciprocal(s, approx=True)              # EUP slot, ~free
    inv = inv * (2.0 - s * inv)                      # one Newton step -> f32-exact
    probs_ref[...] = e * inv                         # (TB, Cp) lane-dense store


# ---------------------------------------------------------------------------
# Parameter construction / packing (wrapper side)
# ---------------------------------------------------------------------------
def init_params(key, num_hidden, num_hidden_layers, vmin, vmax, vbins):
    """Synthetic parameters shaped like the PyTorch module (BN in eval mode)."""
    H, L, C = num_hidden, num_hidden_layers, vbins
    ks = jax.random.split(key, 14)

    def u(k, shape, scale=1.0):
        return jax.random.uniform(k, shape, jnp.float32, -scale, scale)

    lin = 1.0 / (H ** 0.5)
    return dict(
        # fc weights stored as (in, out) so the forward is x @ W.
        w1=u(ks[0], (L, H, H), lin), b1=u(ks[1], (L, 1, H), lin),
        w2=u(ks[2], (L, H, H), lin), b2=u(ks[3], (L, 1, H), lin),
        gamma1=1.0 + 0.05 * u(ks[4], (L, 1, H)), beta1=0.05 * u(ks[5], (L, 1, H)),
        mean1=0.1 * u(ks[6], (L, 1, H)), var1=1.0 + 0.2 * u(ks[7], (L, 1, H)),
        gamma2=1.0 + 0.05 * u(ks[8], (L, 1, H)), beta2=0.05 * u(ks[9], (L, 1, H)),
        mean2=0.1 * u(ks[10], (L, 1, H)), var2=1.0 + 0.2 * u(ks[11], (L, 1, H)),
        wd=u(ks[12], (H, C), lin), bd=u(ks[13], (1, C), lin),
        bins=jnp.linspace(float(vmin), float(vmax), num=C,
                          dtype=jnp.float32).reshape(1, C),
    )


def fold_and_pack_params(p, weight_dtype=jnp.bfloat16, eps=1e-5):
    """Fold eval-mode BatchNorm into the linears and pad to lane-aligned shapes."""
    L, H, _ = p["w1"].shape
    C = p["wd"].shape[1]
    Hp = _round_up(H, _LANE)
    Cp = _round_up(C, _LANE)

    # BN(y) = (y - mean)/sqrt(var+eps)*gamma + beta = y*s + t
    s1 = p["gamma1"] / jnp.sqrt(p["var1"] + eps)
    t1 = p["beta1"] - p["mean1"] * s1
    s2 = p["gamma2"] / jnp.sqrt(p["var2"] + eps)
    t2 = p["beta2"] - p["mean2"] * s2

    w1 = p["w1"] * s1                      # scale each output column
    c1 = p["b1"] * s1 + t1
    w2 = p["w2"] * s2
    c2 = p["b2"] * s2 + t2

    pad_w = lambda w: jnp.pad(w, ((0, 0), (0, Hp - H), (0, Hp - H)))
    pad_c = lambda c: jnp.pad(c, ((0, 0), (0, 0), (0, Hp - H)))
    wd = jnp.pad(p["wd"], ((0, Hp - H), (0, Cp - C)))
    # Padded head columns get a huge negative bias -> softmax prob exactly 0.
    # bd stays f32 (required for the -1e30 trick to be exact).
    bd = jnp.pad(p["bd"], ((0, 0), (0, Cp - C)), constant_values=_NEG_INF)

    return dict(
        w1=pad_w(w1).astype(weight_dtype), c1=pad_c(c1),   # biases stay f32
        w2=pad_w(w2).astype(weight_dtype), c2=pad_c(c2),
        wd=wd.astype(weight_dtype), bd=bd,
        bins=p["bins"], num_hidden=H, num_bins=C,
    )


# ---------------------------------------------------------------------------
# Batch tiling
# ---------------------------------------------------------------------------
def _choose_batch_tiling(batch, block_batch):
    """Pick (TB, Bp): TB a multiple of 8, >= 2 grid steps whenever batch > 8."""
    block_batch = max(_SUBLANE, _round_up(int(block_batch), _SUBLANE))
    bp = _round_up(batch, _SUBLANE)
    if bp <= _SUBLANE:
        return bp, bp                      # can't split fewer than 8 rows
    # >= 2 steps so the "parallel" axis shards across both v7x TensorCores and
    # the pipeline overlaps DMA with compute; grow towards 8 steps once tiles
    # would still have >= 64 rows (amortizes ~0.35us/step overhead); never let
    # a tile exceed block_batch.
    n_steps = max(2, min(8, bp // 64), _cdiv(bp, block_batch))
    tb = _round_up(_cdiv(bp, n_steps), _SUBLANE)
    bp = _round_up(bp, tb)
    return tb, bp


# ---------------------------------------------------------------------------
# Forward wrapper
# ---------------------------------------------------------------------------
def value_network_forward(x, packed, block_batch=512):
    """Returns (probs (B, vbins) f32, val (B,) f32), matching the PyTorch module."""
    B, H = x.shape
    assert H == packed["num_hidden"]
    L, Hp, _ = packed["w1"].shape
    Cp = packed["wd"].shape[-1]
    C = packed["num_bins"]
    wbytes = jnp.dtype(packed["w1"].dtype).itemsize

    TB, Bp = _choose_batch_tiling(B, block_batch)

    # No lane padding of activations on the host/HBM side (done in-kernel into
    # VMEM scratch); only pad a handful of batch rows when B doesn't tile.
    xin = x.astype(jnp.float32)
    if Bp != B:
        xin = jnp.pad(xin, ((0, Bp - B), (0, 0)))

    # VMEM budget: single-buffered weights/biases + double-buffered activation
    # and output tiles + lane-padding scratch, with headroom.
    weight_bytes = (2 * L * Hp * Hp + Hp * Cp) * wbytes
    bias_bytes = (2 * L * _SUBLANE * Hp + _SUBLANE * Cp) * 4   # sublane-padded
    act_bytes = 2 * TB * H * 4 + 2 * TB * Cp * 4 + TB * Hp * 4
    needed = weight_bytes + bias_bytes + act_bytes
    vmem_limit = int(min(127 << 20, max(2 * needed + (2 << 20), 32 << 20)))

    const3 = lambda i: (0, 0, 0)
    const2 = lambda i: (0, 0)
    single = pl.Buffered(1)   # constant index maps -> 2nd pipeline buffer never used

    scratch_shapes = []
    if H != Hp:
        scratch_shapes.append(pltpu.VMEM((TB, Hp), jnp.float32))

    probs_padded = pl.pallas_call(
        _value_net_kernel,
        out_shape=jax.ShapeDtypeStruct((Bp, Cp), jnp.float32),
        grid=(Bp // TB,),
        in_specs=[
            # activations: unpadded last dim (== full array dim -> legal), tiled batch
            pl.BlockSpec((TB, H), lambda i: (i, 0)),
            # weights / biases: VMEM-resident, single-buffered
            pl.BlockSpec((L, Hp, Hp), const3, pipeline_mode=single),
            pl.BlockSpec((L, 1, Hp), const3, pipeline_mode=single),
            pl.BlockSpec((L, Hp, Hp), const3, pipeline_mode=single),
            pl.BlockSpec((L, 1, Hp), const3, pipeline_mode=single),
            pl.BlockSpec((Hp, Cp), const2, pipeline_mode=single),
            pl.BlockSpec((1, Cp), const2, pipeline_mode=single),
        ],
        out_specs=pl.BlockSpec((TB, Cp), lambda i: (i, 0)),
        scratch_shapes=scratch_shapes,
        compiler_params=pltpu.CompilerParams(
            dimension_semantics=("parallel",),            # megacore/2-TC sharding
            vmem_limit_bytes=vmem_limit),
    )(xin, packed["w1"], packed["c1"], packed["w2"], packed["c2"],
      packed["wd"], packed["bd"])

    probs = probs_padded[:B, :C]
    # Expected value over the bin support (trivial reduction, done in XLA).
    val = jnp.sum(probs * packed["bins"], axis=1)
    return probs, val


# ---------------------------------------------------------------------------
# Pure-JAX reference (mirrors the PyTorch module, BN in eval mode)
# ---------------------------------------------------------------------------
def reference_forward(x, p, eps=1e-5):
    L = p["w1"].shape[0]
    for l in range(L):
        y = x @ p["w1"][l] + p["b1"][l]
        y = (y - p["mean1"][l]) / jnp.sqrt(p["var1"][l] + eps) * p["gamma1"][l] + p["beta1"][l]
        y = jnp.maximum(y, 0.0)
        y = y @ p["w2"][l] + p["b2"][l]
        y = (y - p["mean2"][l]) / jnp.sqrt(p["var2"][l] + eps) * p["gamma2"][l] + p["beta2"][l]
        x = jnp.maximum(x + y, 0.0)
    logits = x @ p["wd"] + p["bd"]
    probs = jax.nn.softmax(logits, axis=1)
    val = jnp.sum(probs * p["bins"], axis=1)
    return probs, val


if __name__ == "__main__":
    # ValueNetwork(num_hidden=32, num_hidden_layers=2, vmin=-1.0, vmax=1.0, vbins=16)
    num_hidden, num_hidden_layers, vmin, vmax, vbins = 32, 2, -1.0, 1.0, 16

    key = jax.random.PRNGKey(0)
    kx, kx2, kp = jax.random.split(key, 3)
    raw = init_params(kp, num_hidden, num_hidden_layers, vmin, vmax, vbins)

    # ---- batch=8 (single tile), f32 weights: exact path ----
    batch = 8
    x = jax.random.normal(kx, (batch, num_hidden), jnp.float32)
    probs_ref, val_ref = reference_forward(x, raw)

    packed_f32 = fold_and_pack_params(raw, weight_dtype=jnp.float32)
    probs, val = value_network_forward(x, packed_f32)
    probs, val = jax.block_until_ready((probs, val))
    assert probs.shape == (batch, vbins) and val.shape == (batch,)
    assert bool(jnp.all(jnp.isfinite(probs))) and bool(jnp.all(jnp.isfinite(val)))
    assert jnp.allclose(probs, probs_ref, atol=1e-4, rtol=1e-4)
    assert jnp.allclose(val, val_ref, atol=1e-4, rtol=1e-4)
    assert jnp.allclose(jnp.sum(probs, axis=1), 1.0, atol=1e-5)

    # ---- bf16 weights (default packing, MXU-friendly), same inputs ----
    packed_bf16 = fold_and_pack_params(raw)   # default weight_dtype=bfloat16
    probs16, val16 = value_network_forward(x, packed_bf16)
    probs16, val16 = jax.block_until_ready((probs16, val16))
    assert jnp.allclose(probs16, probs_ref, atol=5e-2, rtol=5e-2)
    assert jnp.allclose(val16, val_ref, atol=5e-2, rtol=5e-2)
    assert jnp.allclose(jnp.sum(probs16, axis=1), 1.0, atol=1e-4)

    # ---- batch=100: exercises >=2 grid steps and batch-row padding ----
    batch2 = 100
    x2 = jax.random.normal(kx2, (batch2, num_hidden), jnp.float32)
    probs2_ref, val2_ref = reference_forward(x2, raw)
    probs2, val2 = value_network_forward(x2, packed_f32)
    probs2, val2 = jax.block_until_ready((probs2, val2))
    assert probs2.shape == (batch2, vbins) and val2.shape == (batch2,)
    assert jnp.allclose(probs2, probs2_ref, atol=1e-4, rtol=1e-4)
    assert jnp.allclose(val2, val2_ref, atol=1e-4, rtol=1e-4)

    print("KERNEL_OK")
</pallas_src>

<mosaic_0001>
module attributes {stable_mosaic.version = 11 : i64} {
  func.func @_value_net_kernel(%arg0: i32, %arg1: memref<8x32xf32, #tpu.memory_space<vmem>>, %arg2: memref<2x128x128xf32, #tpu.memory_space<vmem>>, %arg3: memref<2x1x128xf32, #tpu.memory_space<vmem>>, %arg4: memref<2x128x128xf32, #tpu.memory_space<vmem>>, %arg5: memref<2x1x128xf32, #tpu.memory_space<vmem>>, %arg6: memref<128x128xf32, #tpu.memory_space<vmem>>, %arg7: memref<1x128xf32, #tpu.memory_space<vmem>>, %arg8: memref<8x128xf32, #tpu.memory_space<vmem>>, %arg9: memref<8x128xf32, #tpu.memory_space<vmem>>) attributes {dimension_semantics = [#tpu.dimension_semantics<parallel>], iteration_bounds = array<i64: 1>, scalar_prefetch = 0 : i64, scratch_operands = 1 : i64, tpu.core_type = #tpu.core_type<tc>, window_params = [{transform_indices = @transform_0, window_bounds = array<i64: 8, 32>}, {pipeline_mode = #tpu.pipeline_mode<synchronous>, transform_indices = @transform_1, window_bounds = array<i64: 2, 128, 128>}, {pipeline_mode = #tpu.pipeline_mode<synchronous>, transform_indices = @transform_2, window_bounds = array<i64: 2, 1, 128>}, {pipeline_mode = #tpu.pipeline_mode<synchronous>, transform_indices = @transform_3, window_bounds = array<i64: 2, 128, 128>}, {pipeline_mode = #tpu.pipeline_mode<synchronous>, transform_indices = @transform_4, window_bounds = array<i64: 2, 1, 128>}, {pipeline_mode = #tpu.pipeline_mode<synchronous>, transform_indices = @transform_5, window_bounds = array<i64: 128, 128>}, {pipeline_mode = #tpu.pipeline_mode<synchronous>, transform_indices = @transform_6, window_bounds = array<i64: 1, 128>}, {transform_indices = @transform_7, window_bounds = array<i64: 8, 128>}]} {
    %cst = arith.constant 0.000000e+00 : f32
    %0 = vector.broadcast %cst : f32 to vector<8x128xf32>
    %c0 = arith.constant 0 : index
    %c0_0 = arith.constant 0 : index
    %1 = vector.load %arg9[%c0, %c0_0] : memref<8x128xf32, #tpu.memory_space<vmem>>, vector<8x128xf32>
    tpu.vector_store %arg9[%c0, %c0_0], %0 {strides = array<i32>} : memref<8x128xf32, #tpu.memory_space<vmem>>, vector<8x128xf32>,
    %c0_1 = arith.constant 0 : index
    %c0_2 = arith.constant 0 : index
    %2 = vector.load %arg1[%c0_1, %c0_2] : memref<8x32xf32, #tpu.memory_space<vmem>>, vector<8x32xf32>
    %c0_3 = arith.constant 0 : index
    %c0_4 = arith.constant 0 : index
    %3 = vector.load %arg9[%c0_3, %c0_4] : memref<8x128xf32, #tpu.memory_space<vmem>>, vector<8x32xf32>
    tpu.vector_store %arg9[%c0_3, %c0_4], %2 {strides = array<i32>} : memref<8x128xf32, #tpu.memory_space<vmem>>, vector<8x32xf32>,
    %c0_5 = arith.constant 0 : index
    %c0_6 = arith.constant 0 : index
    %4 = vector.load %arg9[%c0_5, %c0_6] : memref<8x128xf32, #tpu.memory_space<vmem>>, vector<8x128xf32>
    %c0_i32 = arith.constant 0 : i32
    %c2_i32 = arith.constant 2 : i32
    %5 = arith.addi %c0_i32, %c2_i32 : i32
    %c1_i32 = arith.constant 1 : i32
    %6 = scf.for %arg10 = %c0_i32 to %5 step %c1_i32 iter_args(%arg11 = %4) -> (vector<8x128xf32>)  : i32 {
      %27 = arith.index_cast %arg10 : i32 to index
      %c0_18 = arith.constant 0 : index
      %c0_19 = arith.constant 0 : index
      %28 = vector.load %arg2[%27, %c0_18, %c0_19] : memref<2x128x128xf32, #tpu.memory_space<vmem>>, vector<1x128x128xf32>
      %29 = vector.shape_cast %28 : vector<1x128x128xf32> to vector<128x128xf32>
      %cst_20 = arith.constant dense<0.000000e+00> : vector<8x128xf32>
      %30 = tpu.matmul %arg11, %29, %cst_20 {dimension_numbers = #tpu.dot_dimension_numbers<[1], [0], [0], [1], [0, 0, 1, 1], [], []>} : vector<8x128xf32>, vector<128x128xf32>, vector<8x128xf32> -> vector<8x128xf32>
      %31 = arith.index_cast %arg10 : i32 to index
      %c0_21 = arith.constant 0 : index
      %c0_22 = arith.constant 0 : index
      %32 = vector.load %arg3[%31, %c0_21, %c0_22] : memref<2x1x128xf32, #tpu.memory_space<vmem>>, vector<1x1x128xf32>
      %33 = vector.shape_cast %32 : vector<1x1x128xf32> to vector<1x128xf32>
      %34 = vector.broadcast %33 : vector<1x128xf32> to vector<8x128xf32>
      %35 = arith.addf %30, %34 : vector<8x128xf32>
      %cst_23 = arith.constant 0.000000e+00 : f32
      %36 = vector.broadcast %cst_23 : f32 to vector<8x128xf32>
      %37 = arith.maximumf %35, %36 : vector<8x128xf32>
      %38 = arith.index_cast %arg10 : i32 to index
      %c0_24 = arith.constant 0 : index
      %c0_25 = arith.constant 0 : index
      %39 = vector.load %arg4[%38, %c0_24, %c0_25] : memref<2x128x128xf32, #tpu.memory_space<vmem>>, vector<1x128x128xf32>
      %40 = vector.shape_cast %39 : vector<1x128x128xf32> to vector<128x128xf32>
      %cst_26 = arith.constant dense<0.000000e+00> : vector<8x128xf32>
      %41 = tpu.matmul %37, %40, %cst_26 {dimension_numbers = #tpu.dot_dimension_numbers<[1], [0], [0], [1], [0, 0, 1, 1], [], []>} : vector<8x128xf32>, vector<128x128xf32>, vector<8x128xf32> -> vector<8x128xf32>
      %42 = arith.index_cast %arg10 : i32 to index
      %c0_27 = arith.constant 0 : index
      %c0_28 = arith.constant 0 : index
      %43 = vector.load %arg5[%42, %c0_27, %c0_28] : memref<2x1x128xf32, #tpu.memory_space<vmem>>, vector<1x1x128xf32>
      %44 = vector.shape_cast %43 : vector<1x1x128xf32> to vector<1x128xf32>
      %45 = vector.broadcast %44 : vector<1x128xf32> to vector<8x128xf32>
      %46 = arith.addf %41, %45 : vector<8x128xf32>
      %47 = arith.addf %arg11, %46 : vector<8x128xf32>
      %cst_29 = arith.constant 0.000000e+00 : f32
      %48 = vector.broadcast %cst_29 : f32 to vector<8x128xf32>
      %49 = arith.maximumf %47, %48 : vector<8x128xf32>
      scf.yield %49 : vector<8x128xf32>
    }
    %c2_i32_7 = arith.constant 2 : i32
    %c0_8 = arith.constant 0 : index
    %c0_9 = arith.constant 0 : index
    %7 = vector.load %arg6[%c0_8, %c0_9] : memref<128x128xf32, #tpu.memory_space<vmem>>, vector<128x128xf32>
    %cst_10 = arith.constant dense<0.000000e+00> : vector<8x128xf32>
    %8 = tpu.matmul %6, %7, %cst_10 {dimension_numbers = #tpu.dot_dimension_numbers<[1], [0], [0], [1], [0, 0, 1, 1], [], []>} : vector<8x128xf32>, vector<128x128xf32>, vector<8x128xf32> -> vector<8x128xf32>
    %c0_11 = arith.constant 0 : index
    %c0_12 = arith.constant 0 : index
    %9 = vector.load %arg7[%c0_11, %c0_12] : memref<1x128xf32, #tpu.memory_space<vmem>>, vector<1x128xf32>
    %10 = vector.broadcast %9 : vector<1x128xf32> to vector<8x128xf32>
    %11 = arith.addf %8, %10 : vector<8x128xf32>
    %cst_13 = arith.constant dense<0xFF800000> : vector<8xf32>
    %12 = vector.multi_reduction <maximumf>, %11, %cst_13 [1] : vector<8x128xf32> to vector<8xf32>
    %13 = vector.shape_cast %12 : vector<8xf32> to vector<8x1xf32>
    %14 = vector.broadcast %13 : vector<8x1xf32> to vector<8x128xf32>
    %15 = arith.subf %11, %14 : vector<8x128xf32>
    %16 = math.exp %15 : vector<8x128xf32>
    %cst_14 = arith.constant dense<0.000000e+00> : vector<8xf32>
    %17 = vector.multi_reduction <add>, %16, %cst_14 [1] : vector<8x128xf32> to vector<8xf32>
    %18 = vector.shape_cast %17 : vector<8xf32> to vector<8x1xf32>
    %19 = tpu.reciprocal %18 {approx = true} : vector<8x1xf32> -> vector<8x1xf32>
    %20 = arith.mulf %18, %19 : vector<8x1xf32>
    %cst_15 = arith.constant 2.000000e+00 : f32
    %21 = vector.broadcast %cst_15 : f32 to vector<8x1xf32>
    %22 = arith.subf %21, %20 : vector<8x1xf32>
    %23 = arith.mulf %19, %22 : vector<8x1xf32>
    %24 = vector.broadcast %23 : vector<8x1xf32> to vector<8x128xf32>
    %25 = arith.mulf %16, %24 : vector<8x128xf32>
    %c0_16 = arith.constant 0 : index
    %c0_17 = arith.constant 0 : index
    %26 = vector.load %arg8[%c0_16, %c0_17] : memref<8x128xf32, #tpu.memory_space<vmem>>, vector<8x128xf32>
    tpu.vector_store %arg8[%c0_16, %c0_17], %25 {strides = array<i32>} : memref<8x128xf32, #tpu.memory_space<vmem>>, vector<8x128xf32>,
    return
  }
  func.func @transform_0(%arg0: i32) -> (i32, i32) {
    %c0_i32 = arith.constant 0 : i32
    %c0_i32_0 = arith.constant 0 : i32
    return %arg0, %c0_i32 : i32, i32
  }
  func.func @transform_1(%arg0: i32) -> (i32, i32, i32) {
    %c0_i32 = arith.constant 0 : i32
    %c0_i32_0 = arith.constant 0 : i32
    %c0_i32_1 = arith.constant 0 : i32
    %c0_i32_2 = arith.constant 0 : i32
    return %c0_i32, %c0_i32_0, %c0_i32_1 : i32, i32, i32
  }
  func.func @transform_2(%arg0: i32) -> (i32, i32, i32) {
    %c0_i32 = arith.constant 0 : i32
    %c0_i32_0 = arith.constant 0 : i32
    %c0_i32_1 = arith.constant 0 : i32
    %c0_i32_2 = arith.constant 0 : i32
    return %c0_i32, %c0_i32_0, %c0_i32_1 : i32, i32, i32
  }
  func.func @transform_3(%arg0: i32) -> (i32, i32, i32) {
    %c0_i32 = arith.constant 0 : i32
    %c0_i32_0 = arith.constant 0 : i32
    %c0_i32_1 = arith.constant 0 : i32
    %c0_i32_2 = arith.constant 0 : i32
    return %c0_i32, %c0_i32_0, %c0_i32_1 : i32, i32, i32
  }
  func.func @transform_4(%arg0: i32) -> (i32, i32, i32) {
    %c0_i32 = arith.constant 0 : i32
    %c0_i32_0 = arith.constant 0 : i32
    %c0_i32_1 = arith.constant 0 : i32
    %c0_i32_2 = arith.constant 0 : i32
    return %c0_i32, %c0_i32_0, %c0_i32_1 : i32, i32, i32
  }
  func.func @transform_5(%arg0: i32) -> (i32, i32) {
    %c0_i32 = arith.constant 0 : i32
    %c0_i32_0 = arith.constant 0 : i32
    %c0_i32_1 = arith.constant 0 : i32
    return %c0_i32, %c0_i32_0 : i32, i32
  }
  func.func @transform_6(%arg0: i32) -> (i32, i32) {
    %c0_i32 = arith.constant 0 : i32
    %c0_i32_0 = arith.constant 0 : i32
    %c0_i32_1 = arith.constant 0 : i32
    return %c0_i32, %c0_i32_0 : i32, i32
  }
  func.func @transform_7(%arg0: i32) -> (i32, i32) {
    %c0_i32 = arith.constant 0 : i32
    %c0_i32_0 = arith.constant 0 : i32
    return %arg0, %c0_i32 : i32, i32
  }
}

</mosaic_0001>

<bundles_post_ra>
// kernel: tpu_custom_call.1
= control target key start
LH: loop header
LB: loop body
LE: loop exit
PB: predicated region body
PF: predicated region fallthrough
CT: control target
= control target key end

     0   :  { %12 = vsyncpa [#allocation4], 0  ;;  %s1027_s0 = inlined_call_operand.hbm [shape: f32[8,32], index: 0, kind: input, shape index: {}]   ;;  %s1028_s1 = inlined_call_operand.hbm [shape: f32[2,128,128], index: 1, kind: input, shape index: {}]   ;;  %s1029_s2 = inlined_call_operand.vmem [shape: f32[2,1,128], index: 2, kind: input, shape index: {}]   ;;  %s1030_s3 = inlined_call_operand.hbm [shape: f32[2,128,128], index: 3, kind: input, shape index: {}]   ;;  %s1031_s4 = inlined_call_operand.vmem [shape: f32[2,1,128], index: 4, kind: input, shape index: {}]   ;;  %s1032_s5 = inlined_call_operand.hbm [shape: f32[128,128], index: 5, kind: input, shape index: {}]   ;;  %s1033_s6 = inlined_call_operand.vmem [shape: f32[1,128], index: 6, kind: input, shape index: {}]   ;;  %s1034_s7 = inlined_call_operand.hbm [shape: f32[8,128], index: 7, kind: output, shape index: {}]  }
   0x1   :  { %13 = vsyncpa [#allocation7], 0 }
   0x2   :  { %14 = vsyncpa [#allocation10], 0 }
   0x3   :  { %15 = vsyncpa [#allocation5], 0  ;;  %s822_s24 = smov [#allocation6]   ;;  %s688_s28 = scalar_lea.hbm %s1028_s1, 4096 }
   0x4   :  { %s31_s25 = sshll.u32 %s822_s24, 4  ;;  %p689_p0 = scmp.ne.s32.totalorder %s1028_s1, %s688_s28  ;;  %s32_s25 = int_to_ptr.vmem [resolvable:$true] %s31_s25 }
   0x5   :  { %p692_p1 = scmp.lt.u32.totalorder %s688_s28, %s1028_s1 }
   0x7   :  { %p694_p2 = pnand %p692_p1, %p689_p0 }
   0x9   :  { %697 = shalt.err (!%p694_p2)
}
   0xa   :  { %s698_s10 = scalar_lea.vmem %s32_s25, 4096  ;;  %p703_p4 = scmp.lt.s32.totalorder %s32_s25, %s32_s25 }
   0xb   :  { %p699_p3 = scmp.ne.s32.totalorder %s32_s25, %s698_s10  ;;  %p704_p5 = scmp.lt.s32.totalorder %s698_s10, %s698_s10 }
   0xd   :  { %p705_p6 = por %p704_p5, %p703_p4 }
   0xf   :  { %p706_p7 = pnand %p705_p6, %p699_p3 }
  0x11   :  { %709 = shalt.err (!%p706_p7)
}
  0x12   :  { %s823_s11 = smov 128   ;;  %s824_s12 = smov 8  }
  0x13   :  { %37 = dma.hbm_to_vmem [thread:$0]  %s1028_s1, 4096, %s32_s25, [#allocation7], %s823_s11, %s823_s11, %s824_s12  }
  0x14   :  { %s825_s15 = smov [#allocation3]   ;;  %s826_s17 = smov [#allocation8]  }
  0x15   :  { %s22_s16 = sshll.u32 %s825_s15, 4  ;;  %s45_s18 = sshll.u32 %s826_s17, 4  ;;  %s23_s16 = int_to_ptr.vmem [resolvable:$true] %s22_s16  ;;  %s46_s18 = int_to_ptr.vmem [resolvable:$true] %s45_s18 }
  0x16   :  { %s710_s21 = scalar_lea.hbm %s1027_s0, 128 }
  0x17   :  { %p711_p8 = scmp.ne.s32.totalorder %s1027_s0, %s710_s21  ;;  %p714_p9 = scmp.lt.u32.totalorder %s710_s21, %s1027_s0 }
  0x19   :  { %p716_p10 = pnand %p714_p9, %p711_p8 }
  0x1b   :  { %719 = shalt.err (!%p716_p10)
}
  0x1c   :  { %s720_s1 = scalar_lea.vmem %s23_s16, 128  ;;  %p725_p12 = scmp.lt.s32.totalorder %s23_s16, %s23_s16 }
  0x1d   :  { %p721_p11 = scmp.ne.s32.totalorder %s23_s16, %s720_s1  ;;  %p726_p13 = scmp.lt.s32.totalorder %s720_s1, %s720_s1 }
  0x1f   :  { %p727_p0 = por %p726_p13, %p725_p12 }
  0x21   :  { %p728_p1 = pnand %p727_p0, %p721_p11 }
  0x23   :  { %731 = shalt.err (!%p728_p1)
}
  0x24   :  { %25 = dma.hbm_to_vmem [thread:$0]  %s1027_s0, 128, %s23_s16, [#allocation4]  }
  0x25   :  { %s732_s30 = scalar_lea.hbm %s1030_s3, 4096 }
  0x26   :  { %p733_p2 = scmp.ne.s32.totalorder %s1030_s3, %s732_s30  ;;  %p736_p3 = scmp.lt.u32.totalorder %s732_s30, %s1030_s3 }
  0x28   :  { %p738_p4 = pnand %p736_p3, %p733_p2 }
  0x2a   :  { %741 = shalt.err (!%p738_p4)
}
  0x2b   :  { %s742_s14 = scalar_lea.vmem %s46_s18, 4096  ;;  %p747_p6 = scmp.lt.s32.totalorder %s46_s18, %s46_s18 }
  0x2c   :  { %p743_p5 = scmp.ne.s32.totalorder %s46_s18, %s742_s14  ;;  %p748_p7 = scmp.lt.s32.totalorder %s742_s14, %s742_s14 }
  0x2e   :  { %p749_p8 = por %p748_p7, %p747_p6 }
  0x30   :  { %p750_p9 = pnand %p749_p8, %p743_p5 }
  0x32   :  { %753 = shalt.err (!%p750_p9)
}
  0x33   :  { %51 = dma.hbm_to_vmem [thread:$0]  %s1030_s3, 4096, %s46_s18, [#allocation7], %s823_s11, %s823_s11, %s824_s12  }
  0x34   :  { %s827_s16 = smov [#allocation9]   ;;  %s754_s21 = scalar_lea.hbm %s1032_s5, 2048 }
  0x35   :  { %s59_s17 = sshll.u32 %s827_s16, 4  ;;  %p755_p10 = scmp.ne.s32.totalorder %s1032_s5, %s754_s21  ;;  %s60_s17 = int_to_ptr.vmem [resolvable:$true] %s59_s17 }
  0x36   :  { %p758_p11 = scmp.lt.u32.totalorder %s754_s21, %s1032_s5 }
  0x38   :  { %p760_p12 = pnand %p758_p11, %p755_p10 }
  0x3a   :  { %763 = shalt.err (!%p760_p12)
}
  0x3b   :  { %s764_s1 = scalar_lea.vmem %s60_s17, 2048  ;;  %p769_p0 = scmp.lt.s32.totalorder %s60_s17, %s60_s17 }
  0x3c   :  { %p765_p13 = scmp.ne.s32.totalorder %s60_s17, %s764_s1  ;;  %p770_p1 = scmp.lt.s32.totalorder %s764_s1, %s764_s1 }
  0x3e   :  { %p771_p2 = por %p770_p1, %p769_p0 }
  0x40   :  { %p772_p3 = pnand %p771_p2, %p765_p13 }
  0x42   :  { %775 = shalt.err (!%p772_p3)
}
  0x43   :  { %65 = dma.hbm_to_vmem [thread:$0]  %s1032_s5, 2048, %s60_s17, [#allocation10], %s823_s11, %s823_s11, %s824_s12  }
  0x44   :  { %806 = dma.done.wait [#allocation4], 128  }
  0x45   :  { %807 = vsyncadd [#allocation4], 4294967168 }
  0x46   :  { %808 = dma.done.wait [#allocation7], 8192  }
  0x47   :  { %809 = vsyncadd [#allocation7], 4294959104 }
  0x48   :  { %810 = dma.done.wait [#allocation10], 2048  }
  0x49   :  { %811 = vsyncadd [#allocation10], 4294965248  ;;  %v828_v0 = vmov 0.0   ;;  %vm82_vm0 = vcmask 261120   ;;  %v81_v1 = vld [vmem:[#allocation3] sm:$0xff]  ;;  %s935_s25 = smov 0  }
  0x4a   :  { %80 = vst [vmem:[#allocation2] sm:$0xff] %v828_v0 }
  0x4b   :  { %83 = vst.msk [vmem:[#allocation2] sm:$0xff] %vm82_vm0, %v81_v1 }
  0x52   :  { %v84_v2 = vld [vmem:[#allocation2] sm:$0xff]  }
  0x53 LB: > { %v829_v3 = vmov 0.0|0.0   ;;  %vm830_vm1 = vmmov 0   ;;  %v831_v4 = vmov 0.0   ;;  %s423_s5 = sshll.u32 %s820_s25, 7  ;;  %s110_s29 = scalar_lea.vmem %s1029_s2, %s820_s25  ;;  %s820_s25 = sphi %s935_s25, %s90_s25   ;;  %v816_v2 = vphi %v84_v2, %v1035_v2  }
  0x54   : > { %583 = vmatprep.subr.bf16.mxu0 %v829_v3  ;;  %510 = vmatprep.mubr.msk.f32.mxu0 %vm830_vm1, %v831_v4  ;;  %s946_s11 = scalar_lea.vmem [#allocation6], %s423_s5  ;;  %s955_s12 = scalar_lea.vmem [#allocation8], %s423_s5  ;;  %v424_v53 = vld [vmem:[%s110_s29] ss:$0 sm:$0xff] }
  0x55   : > { %607 = vmatprep.subr.bf16.mxu1 %v829_v3  ;;  %545 = vmatprep.mubr.msk.f32.mxu1 %vm830_vm1, %v831_v4  ;;  %v94_v5 = vld [vmem:[%s946_s11] sm:$0xff]  ;;  %v95_v6 = vld [vmem:[%s946_s11 + $0x8] sm:$0xff]  ;;  %v96_v7 = vld [vmem:[%s946_s11 + $0x10] sm:$0xff]  ;;  %s206_s9 = scalar_lea.vmem %s1031_s4, %s820_s25  ;;  %s90_s25 = sadd.s32 1, %s820_s25  }
  0x56   : > { %v584_v8 = vpack.c.bf16 %v95_v6, %v94_v5  ;;  %v97_v9 = vld [vmem:[%s946_s11 + $0x18] sm:$0xff]  ;;  %v98_v11 = vld [vmem:[%s946_s11 + $0x20] sm:$0xff]  ;;  %v99_v12 = vld [vmem:[%s946_s11 + $0x28] sm:$0xff]  ;;  %p87_p4 = scmp.ge.s32.totalorder %s90_s25, 2  }
  0x57   : > { %v587_v10 = vpack.c.bf16 %v97_v9, %v96_v7  ;;  %v190_v13 = vld [vmem:[%s955_s12] sm:$0xff]  ;;  %v191_v14 = vld [vmem:[%s955_s12 + $0x8] sm:$0xff]  ;;  %v192_v16 = vld [vmem:[%s955_s12 + $0x10] sm:$0xff]  ;;  %v590_v18 = vpack.c.bf16 %v99_v12, %v98_v11  ;;  %v832_v5 = vmov (%p87_p4), 0.0|0.0   ;;  %vm833_vm2 = vmmov (%p87_p4), 0   ;;  %s834_s10 = smov (%p87_p4), [#allocation11]  }
  0x58   : > { %585 = vmatpush3.bf16.msra.mxu0 %v584_v8  ;;  %v608_v15 = vpack.c.bf16 %v191_v14, %v190_v13  ;;  %v193_v17 = vld [vmem:[%s955_s12 + $0x18] sm:$0xff]  ;;  %v100_v19 = vld [vmem:[%s946_s11 + $0x30] sm:$0xff]  ;;  %v194_v22 = vld [vmem:[%s955_s12 + $0x20] sm:$0xff]  ;;  %s398_s13 = sshll.u32 (%p87_p4), %s834_s10, 4  ;;  %s399_s13 = int_to_ptr.vmem [resolvable:$true] %s398_s13 }
  0x59   : > { %586 = vmatprep.subr.bf16.mxu0 %v829_v3  ;;  %v101_v20 = vld [vmem:[%s946_s11 + $0x38] sm:$0xff]  ;;  %v611_v21 = vpack.c.bf16 %v193_v17, %v192_v16  ;;  %v195_v23 = vld [vmem:[%s955_s12 + $0x28] sm:$0xff]  ;;  %v102_v25 = vld [vmem:[%s946_s11 + $0x40] sm:$0xff]  ;;  %p781_p6 = scmp.lt.s32.totalorder (%p87_p4), %s399_s13, %s399_s13 }
  0x5a   : > { %609 = vmatpush3.bf16.msra.mxu1 %v608_v15  ;;  %v593_v24 = vpack.c.bf16 %v101_v20, %v100_v19  ;;  %v103_v26 = vld [vmem:[%s946_s11 + $0x48] sm:$0xff]  ;;  %v614_v27 = vpack.c.bf16 %v195_v23, %v194_v22  ;;  %v196_v28 = vld [vmem:[%s955_s12 + $0x30] sm:$0xff]  ;;  %v197_v29 = vld [vmem:[%s955_s12 + $0x38] sm:$0xff] }
  0x5b   : > { %610 = vmatprep.subr.bf16.mxu1 %v829_v3  ;;  %v596_v30 = vpack.c.bf16 %v103_v26, %v102_v25  ;;  %v104_v31 = vld [vmem:[%s946_s11 + $0x50] sm:$0xff]  ;;  %v105_v32 = vld [vmem:[%s946_s11 + $0x58] sm:$0xff]  ;;  %v617_v33 = vpack.c.bf16 %v197_v29, %v196_v28  ;;  %v198_v34 = vld [vmem:[%s955_s12 + $0x40] sm:$0xff] }
  0x5c   : > { %588 = vmatpush3.bf16.msra.mxu0 %v587_v10  ;;  %v199_v35 = vld [vmem:[%s955_s12 + $0x48] sm:$0xff]  ;;  %v599_v36 = vpack.c.bf16 %v105_v32, %v104_v31  ;;  %v106_v37 = vld [vmem:[%s946_s11 + $0x60] sm:$0xff]  ;;  %v200_v40 = vld [vmem:[%s955_s12 + $0x50] sm:$0xff] }
  0x5d   : > { %589 = vmatprep.subr.bf16.mxu0 %v829_v3  ;;  %v107_v38 = vld [vmem:[%s946_s11 + $0x68] sm:$0xff]  ;;  %v620_v39 = vpack.c.bf16 %v199_v35, %v198_v34  ;;  %v201_v41 = vld [vmem:[%s955_s12 + $0x58] sm:$0xff]  ;;  %v108_v43 = vld [vmem:[%s946_s11 + $0x70] sm:$0xff] }
  0x5e   : > { %612 = vmatpush3.bf16.msra.mxu1 %v611_v21  ;;  %v602_v42 = vpack.c.bf16 %v107_v38, %v106_v37  ;;  %v109_v44 = vld [vmem:[%s946_s11 + $0x78] sm:$0xff]  ;;  %v623_v45 = vpack.c.bf16 %v201_v41, %v200_v40  ;;  %v202_v46 = vld [vmem:[%s955_s12 + $0x60] sm:$0xff]  ;;  %v203_v47 = vld [vmem:[%s955_s12 + $0x68] sm:$0xff] }
  0x5f   : > { %613 = vmatprep.subr.bf16.mxu1 %v829_v3  ;;  %v605_v48 = vpack.c.bf16 %v109_v44, %v108_v43  ;;  %v626_v49 = vpack.c.bf16 %v203_v47, %v202_v46  ;;  %v204_v50 = vld [vmem:[%s955_s12 + $0x70] sm:$0xff]  ;;  %v205_v51 = vld [vmem:[%s955_s12 + $0x78] sm:$0xff]  ;;  %v425_v58 = vld [vmem:[%s206_s9] ss:$0 sm:$0xff] }
  0x60   : > { %591 = vmatpush3.bf16.msra.mxu0 %v590_v18  ;;  %v629_v52 = vpack.c.bf16 %v205_v51, %v204_v50  ;;  %v286_v1 = vld [vmem:[#allocation9] sm:$0xff] (%p87_p4)  ;;  %v288_v4 = vld [vmem:[#allocation9 + $0x10] sm:$0xff] (%p87_p4)  ;;  %v289_v7 = vld [vmem:[#allocation9 + $0x18] sm:$0xff] (%p87_p4) }
  0x61   : > { %592 = vmatprep.subr.bf16.mxu0 %v829_v3  ;;  %v290_v8 = vld [vmem:[#allocation9 + $0x20] sm:$0xff] (%p87_p4)  ;;  %v291_v9 = vld [vmem:[#allocation9 + $0x28] sm:$0xff] (%p87_p4)  ;;  %v292_v11 = vld [vmem:[#allocation9 + $0x30] sm:$0xff] (%p87_p4) }
  0x62   : > { %615 = vmatpush3.bf16.msra.mxu1 %v614_v27  ;;  %v638_v10 = vpack.c.bf16 (%p87_p4), %v291_v9, %v290_v8  ;;  %v293_v12 = vld [vmem:[#allocation9 + $0x38] sm:$0xff] (%p87_p4)  ;;  %v294_v14 = vld [vmem:[#allocation9 + $0x40] sm:$0xff] (%p87_p4)  ;;  %v295_v15 = vld [vmem:[#allocation9 + $0x48] sm:$0xff] (%p87_p4) }
  0x63   : > { %616 = vmatprep.subr.bf16.mxu1 %v829_v3  ;;  %v641_v13 = vpack.c.bf16 (%p87_p4), %v293_v12, %v292_v11  ;;  %v644_v16 = vpack.c.bf16 (%p87_p4), %v295_v15, %v294_v14  ;;  %v296_v17 = vld [vmem:[#allocation9 + $0x50] sm:$0xff] (%p87_p4)  ;;  %v298_v19 = vld [vmem:[#allocation9 + $0x60] sm:$0xff] (%p87_p4)  ;;  %v299_v20 = vld [vmem:[#allocation9 + $0x68] sm:$0xff] (%p87_p4) }
  0x64   : > { %594 = vmatpush3.bf16.msra.mxu0 %v593_v24  ;;  %v650_v21 = vpack.c.bf16 (%p87_p4), %v299_v20, %v298_v19  ;;  %v300_v22 = vld [vmem:[#allocation9 + $0x70] sm:$0xff] (%p87_p4)  ;;  %v301_v23 = vld [vmem:[#allocation9 + $0x78] sm:$0xff] (%p87_p4) }
  0x65   : > { %595 = vmatprep.subr.bf16.mxu0 %v829_v3  ;;  %v653_v24 = vpack.c.bf16 (%p87_p4), %v301_v23, %v300_v22  ;;  %v426_v25 = vld [vmem:[%s1033_s6] ss:$0 sm:$0xff] (%p87_p4)  ;;  %s776_s6 = scalar_lea.vmem (%p87_p4), %s399_s13, 128 }
  0x66   : > { %618 = vmatpush3.bf16.msra.mxu1 %v617_v33  ;;  %p777_p5 = scmp.ne.s32.totalorder (%p87_p4), %s399_s13, %s776_s6  ;;  %p782_p7 = scmp.lt.s32.totalorder (%p87_p4), %s776_s6, %s776_s6 }
  0x67   : > { %619 = vmatprep.subr.bf16.mxu1 %v829_v3 }
  0x68   : > { %597 = vmatpush3.bf16.msra.mxu0 %v596_v30  ;;  %p783_p8 = por (%p87_p4), %p782_p7, %p781_p6 }
  0x69   : > { %598 = vmatprep.subr.bf16.mxu0 %v829_v3 }
  0x6a   : > { %621 = vmatpush3.bf16.msra.mxu1 %v620_v39  ;;  %p784_p9 = pnand (%p87_p4), %p783_p8, %p777_p5 }
  0x6b   : > { %622 = vmatprep.subr.bf16.mxu1 %v829_v3 }
  0x6c   : > { %600 = vmatpush3.bf16.msra.mxu0 %v599_v36 }
  0x6d   : > { %601 = vmatprep.subr.bf16.mxu0 %v829_v3 }
  0x6e   : > { %624 = vmatpush3.bf16.msra.mxu1 %v623_v45 }
  0x6f   : > { %625 = vmatprep.subr.bf16.mxu1 %v829_v3 }
  0x70   : > { %603 = vmatpush3.bf16.msra.mxu0 %v602_v42 }
  0x71   : > { %604 = vmatprep.subr.bf16.mxu0 %v829_v3 }
  0x72   : > { %627 = vmatpush3.bf16.msra.mxu1 %v626_v49 }
  0x73   : > { %628 = vmatprep.subr.bf16.mxu1 %v829_v3  ;;  %v287_v3 = vld [vmem:[#allocation9 + $0x8] sm:$0xff] (%p87_p4) }
  0x74   : > { %606 = vmatpush3.bf16.msra.mxu0 %v605_v48  ;;  %v632_v6 = vpack.c.bf16 (%p87_p4), %v287_v3, %v286_v1 }
  0x75   :  { %631 = vmatprep.subr.bf16.mxu0 (%p87_p4), %v832_v5 }
  0x76   : > { %630 = vmatpush3.bf16.msra.mxu1 %v629_v52 }
  0x77   : > { %511 = vmatmul.mubr.f32.vlgmr.msra.gmra.mrb[0].mxu0 %v816_v2 }
  0x78   :  { %580 = vmatprep.mubr.msk.f32.mxu0 (%p87_p4), %vm833_vm2, %v828_v0  ;;  %633 = vmatpush3.bf16.msra.mxu0 (%p87_p4), %v632_v6  ;;  %v297_v0 = vld [vmem:[#allocation9 + $0x58] sm:$0xff] (%p87_p4) }
  0x79   :  { %634 = vmatprep.subr.bf16.mxu0 (%p87_p4), %v832_v5  ;;  %v647_v18 = vpack.c.bf16 (%p87_p4), %v297_v0, %v296_v17 }
 0x14a   : > { %v184_v54 = vpop.f32.mrb[0].mxu0 }
 0x14b   : > { %v185_v55 = vadd.f32 %v424_v53, %v184_v54  ;;  %v512_v56 = vpop.f32.mrb[1].mxu0 }
 0x14d   : > { %v188_v57 = vmax.f32 %v185_v55, 0.0 }
 0x14f   : > { %546 = vmatmul.mubr.f32.vlgmr.msra.gmra.mrb[0].mxu1 %v188_v57 }
 0x222   : > { %v280_v59 = vpop.f32.mrb[0].mxu1 }
 0x223   : > { %v281_v60 = vadd.f32 %v425_v58, %v280_v59  ;;  %v547_v61 = vpop.f32.mrb[1].mxu1  ;;  %89 = sbr.rel (!%p87_p4) target bundleno = 83 (0x53), region = 75 }
 0x225   : > { %v284_v62 = vadd.f32 %v816_v2, %v281_v60 }
 0x227   : > { %v285_v63 = vmax.f32 %v284_v62, 0.0  }
 0x229   : > { %v1035_v2 = vmov %v285_v63 }
 0x22a   :  { %v635_v2 = vpack.c.bf16 %v289_v7, %v288_v4 }
 0x22c   :  { %636 = vmatpush3.bf16.msra.mxu0 %v635_v2 }
 0x22d   :  { %637 = vmatprep.subr.bf16.mxu0 %v832_v5 }
 0x230   :  { %639 = vmatpush3.bf16.msra.mxu0 %v638_v10 }
 0x231   :  { %640 = vmatprep.subr.bf16.mxu0 %v832_v5 }
 0x234   :  { %642 = vmatpush3.bf16.msra.mxu0 %v641_v13 }
 0x235   :  { %643 = vmatprep.subr.bf16.mxu0 %v832_v5 }
 0x238   :  { %645 = vmatpush3.bf16.msra.mxu0 %v644_v16 }
 0x239   :  { %646 = vmatprep.subr.bf16.mxu0 %v832_v5 }
 0x23c   :  { %648 = vmatpush3.bf16.msra.mxu0 %v647_v18 }
 0x23d   :  { %649 = vmatprep.subr.bf16.mxu0 %v832_v5 }
 0x240   :  { %651 = vmatpush3.bf16.msra.mxu0 %v650_v21 }
 0x241   :  { %652 = vmatprep.subr.bf16.mxu0 %v832_v5 }
 0x244   :  { %654 = vmatpush3.bf16.msra.mxu0 %v653_v24 }
 0x247   :  { %581 = vmatmul.mubr.f32.vlgmr.msra.gmra.mrb[0].mxu0 %v285_v63 }
 0x31a   :  { %v375_v26 = vpop.f32.mrb[0].mxu0 }
 0x31b   :  { %v376_v27 = vadd.f32 %v426_v25, %v375_v26  ;;  %v582_v28 = vpop.f32.mrb[1].mxu0 }
 0x31d   :  { %379 = vmax.xlane.f32.xlu0 %v376_v27 }
 0x3aa   :  { %v380_v29 = vpop.xlane.xlu0 %379 }
 0x3ab   :  { %v381_v30 = vsub.f32 %v376_v27, %v380_v29 }
 0x3ad   :  { %v382_v31 = vmul.f32 1.442695, %v381_v30 }
 0x3af   :  { %684 = vpow2.f32 %v382_v31 }
 0x3b9   :  { %v685_v32 = vpop.eup %684 }
 0x3ba   :  { %384 = vadd.xlane.f32.xlu0 %v685_v32 }
 0x447   :  { %v385_v33 = vpop.xlane.xlu0 %384 }
 0x448   :  { %686 = vrcp.f32 %v385_v33 }
 0x452   :  { %v687_v34 = vpop.eup %686 }
 0x453   :  { %v387_v35 = vmul.f32 %v687_v34, %v385_v33 }
 0x455   :  { %v388_v36 = vsub.f32 2.0, %v387_v35 }
 0x457   :  { %v389_v37 = vmul.f32 %v687_v34, %v388_v36 }
 0x459   :  { %v390_v38 = vmul.f32 %v685_v32, %v389_v37 }
 0x45b   :  { %391 = vst [vmem:[#allocation11] sm:$0xff] %v390_v38 }
 0x45c   :  { %787 = shalt.err (!%p784_p9)
}
 0x45d   :  { %s788_s15 = scalar_lea.hbm %s1034_s7, 128 }
 0x45e   :  { %p789_p10 = scmp.ne.s32.totalorder %s1034_s7, %s788_s15  ;;  %p792_p11 = scmp.lt.u32.totalorder %s788_s15, %s1034_s7 }
 0x460   :  { %p794_p12 = pnand %p792_p11, %p789_p10 }
 0x462   :  { %797 = shalt.err (!%p794_p12)
}
 0x463   :  { %401 = dma.vmem_to_hbm [thread:$0]  %s399_s13, 128, %s1034_s7, [#allocation5]  }
 0x464   :  { %812 = dma.done.wait [#allocation5], 128  }
 0x465   :  { %813 = vsyncadd [#allocation5], 4294967168 }
 0x466   :  { %405 = vsyncpa [#allocation4], 1 }
 0x467   :  { %406 = vsyncpa [#allocation7], 1 }
 0x468   :  { %407 = vsyncpa [#allocation10], 1 }
 0x469   :  { %408 = vsyncpa [#allocation5], 1 }

</bundles_post_ra>
